<compile_context>
chip_gen: v7x
topology: tpu7x:2x2x1
jax: 0.10.0
libtpu: 0.0.40
codegen_flags: <defaults>
</compile_context>

<pallas_src>
import numpy as np
import jax
import jax.numpy as jnp
from jax.experimental import pallas as pl
from jax.experimental.pallas import tpu as pltpu


def _interp_matrix(in_len: int, out_len: int) -> jnp.ndarray:
    """F.interpolate(..., mode='linear', align_corners=False) expressed as an
    [in_len, out_len] matrix applied on the right."""
    scale = in_len / out_len
    i = np.arange(out_len)
    src = (i + 0.5) * scale - 0.5
    src = np.clip(src, 0.0, None)                       # PyTorch clamps negative coords to 0
    left = np.minimum(np.floor(src).astype(np.int64), in_len - 1)
    right = np.minimum(left + 1, in_len - 1)
    w = src - left
    M = np.zeros((in_len, out_len), np.float32)
    M[left, i] += (1.0 - w)
    M[right, i] += w
    return jnp.asarray(M)


def _head_kernel(x_ref, w_ref, b_ref, o_ref):
    # x_ref: (G, d_model, num_patch)   native x layout (no pre-transpose)
    # w_ref: (patch_len, d_model)      fused  M^T @ W_linear
    # b_ref: (patch_len, 1)            fused  M^T @ bias
    # o_ref: (G, patch_len, num_patch)
    w = w_ref[...]
    b = b_ref[...]
    for i in range(x_ref.shape[0]):     # static (unrolled) loop over the (b, v) slabs
        y = jnp.dot(w, x_ref[i], preferred_element_type=jnp.float32)   # [patch_len, num_patch]
        o_ref[i] = (y + b).astype(o_ref.dtype)


def decoder_predict_head(x, weight, bias, patch_len, *, bv_group=None):
    """
    x:      [bs, nvars, d_model, num_patch]   (native PyTorch layout, NOT pre-transposed)
    weight: [target_patch_len, d_model]       (nn.Linear weight)
    bias:   [target_patch_len]
    returns [bs, num_patch * patch_len, nvars]
    Dropout is identity at inference time.
    """
    bs, nvars, d_model, num_patch = x.shape
    tpl = weight.shape[0]

    # ---- algebraic fusion: (x^T @ W^T + b) @ M  ==  W_fusedT @ x + b_fusedT (constants) ----
    M = _interp_matrix(tpl, patch_len)                                   # [tpl, patch_len]
    w_fusedT = jnp.dot(M.T, jnp.asarray(weight, jnp.float32))            # [patch_len, d_model]
    b_fusedT = jnp.dot(M.T, jnp.asarray(bias, jnp.float32)[:, None])     # [patch_len, 1]

    BV = bs * nvars
    x3 = x.reshape(BV, d_model, num_patch)    # free reshape of leading dims, no HBM transpose

    if bv_group is None:
        # ~1 MiB of x per grid step (amortizes per-step overhead), bounded in-kernel unroll,
        # and at least 2 grid steps so the grid can shard across v7x's two TensorCores.
        slab_bytes = d_model * num_patch * x.dtype.itemsize
        bv_group = max(1, min(BV, 16, (1 << 20) // max(slab_bytes, 1)))
    g = max(1, min(bv_group, BV))
    if BV >= 2:
        g = min(g, pl.cdiv(BV, 2))
    grid = (pl.cdiv(BV, g),)

    out = pl.pallas_call(
        _head_kernel,
        out_shape=jax.ShapeDtypeStruct((BV, patch_len, num_patch), x.dtype),
        grid_spec=pltpu.PrefetchScalarGridSpec(
            num_scalar_prefetch=0,
            grid=grid,
            in_specs=[
                pl.BlockSpec((g, d_model, num_patch), lambda i: (i, 0, 0)),
                pl.BlockSpec((patch_len, d_model), lambda i: (0, 0)),    # grid-invariant
                pl.BlockSpec((patch_len, 1), lambda i: (0, 0)),          # grid-invariant
            ],
            out_specs=pl.BlockSpec((g, patch_len, num_patch), lambda i: (i, 0, 0)),
        ),
        compiler_params=pltpu.CompilerParams(
            dimension_semantics=("parallel",),
            vmem_limit_bytes=32 * 1024 * 1024,   # safe on v5e/v6e/v7x, ample for 2x-buffered blocks
        ),
    )(x3, w_fusedT, b_fusedT)

    # out[bv, l, n] == result[b, v, n, l]; final layout wants [b, n, l, v].
    # TODO(synk): for large nvars, write the final layout directly from the kernel via the
    # out_spec index_map; with tiny nvars the lane-dense kernel layout + XLA transpose beats
    # a nvars-wide (lane-sparse) kernel store.
    y = out.reshape(bs, nvars, patch_len, num_patch)
    y = jnp.transpose(y, (0, 3, 2, 1))                   # -> [bs, num_patch, patch_len, nvars]
    return y.reshape(bs, num_patch * patch_len, nvars)


def _reference(x, weight, bias, patch_len):
    """Pure-JAX reference of the (unfused) PyTorch forward (dropout = identity)."""
    bs, nvars, d_model, num_patch = x.shape
    tpl = weight.shape[0]
    h = jnp.einsum("bvpd,td->bvpt", jnp.transpose(x, (0, 1, 3, 2)), weight) + bias
    M = _interp_matrix(tpl, patch_len)
    r = jnp.einsum("bvpt,tl->bvpl", h, M)
    r = jnp.transpose(r, (0, 2, 3, 1))
    return r.reshape(bs, num_patch * patch_len, nvars)


if __name__ == "__main__":
    # Small shapes consistent with the module's forward.
    bs, nvars, d_model, num_patch = 2, 4, 32, 8
    target_patch_len, patch_len = 12, 16
    dropout = 0.1  # identity at inference

    key = jax.random.PRNGKey(0)
    kx, kw, kb = jax.random.split(key, 3)
    x = jax.random.normal(kx, (bs, nvars, d_model, num_patch), dtype=jnp.float32)
    bound = 1.0 / np.sqrt(d_model)   # PyTorch nn.Linear default init range
    weight = jax.random.uniform(kw, (target_patch_len, d_model), jnp.float32, -bound, bound)
    bias = jax.random.uniform(kb, (target_patch_len,), jnp.float32, -bound, bound)

    out = decoder_predict_head(x, weight, bias, patch_len)
    out = jax.block_until_ready(out)

    ref = _reference(x, weight, bias, patch_len)
    assert out.shape == (bs, num_patch * patch_len, nvars), out.shape
    assert jnp.allclose(out, ref, atol=1e-4, rtol=1e-4), "mismatch vs reference"

    print("KERNEL_OK")
</pallas_src>

<mosaic_0001>
module attributes {stable_mosaic.version = 11 : i64} {
  func.func @_head_kernel(%arg0: i32, %arg1: memref<4x32x8xf32, #tpu.memory_space<vmem>>, %arg2: memref<16x32xf32, #tpu.memory_space<vmem>>, %arg3: memref<16x1xf32, #tpu.memory_space<vmem>>, %arg4: memref<4x16x8xf32, #tpu.memory_space<vmem>>) attributes {dimension_semantics = [#tpu.dimension_semantics<parallel>], iteration_bounds = array<i64: 2>, scalar_prefetch = 0 : i64, scratch_operands = 0 : i64, tpu.core_type = #tpu.core_type<tc>, window_params = [{transform_indices = @transform_0, window_bounds = array<i64: 4, 32, 8>}, {pipeline_mode = #tpu.pipeline_mode<synchronous>, transform_indices = @transform_1, window_bounds = array<i64: 16, 32>}, {pipeline_mode = #tpu.pipeline_mode<synchronous>, transform_indices = @transform_2, window_bounds = array<i64: 16, 1>}, {transform_indices = @transform_3, window_bounds = array<i64: 4, 16, 8>}]} {
    %c0 = arith.constant 0 : index
    %c0_0 = arith.constant 0 : index
    %0 = vector.load %arg2[%c0, %c0_0] : memref<16x32xf32, #tpu.memory_space<vmem>>, vector<16x32xf32>
    %c0_1 = arith.constant 0 : index
    %c0_2 = arith.constant 0 : index
    %1 = vector.load %arg3[%c0_1, %c0_2] : memref<16x1xf32, #tpu.memory_space<vmem>>, vector<16x1xf32>
    %c0_3 = arith.constant 0 : index
    %c0_4 = arith.constant 0 : index
    %c0_5 = arith.constant 0 : index
    %2 = vector.load %arg1[%c0_3, %c0_4, %c0_5] : memref<4x32x8xf32, #tpu.memory_space<vmem>>, vector<1x32x8xf32>
    %3 = vector.shape_cast %2 : vector<1x32x8xf32> to vector<32x8xf32>
    %cst = arith.constant dense<0.000000e+00> : vector<16x8xf32>
    %4 = tpu.matmul %0, %3, %cst {dimension_numbers = #tpu.dot_dimension_numbers<[1], [0], [0], [1], [0, 0, 1, 1], [], []>} : vector<16x32xf32>, vector<32x8xf32>, vector<16x8xf32> -> vector<16x8xf32>
    %5 = vector.broadcast %1 : vector<16x1xf32> to vector<16x8xf32>
    %6 = arith.addf %4, %5 : vector<16x8xf32>
    %c0_6 = arith.constant 0 : index
    %c0_7 = arith.constant 0 : index
    %c0_8 = arith.constant 0 : index
    %7 = vector.load %arg4[%c0_6, %c0_7, %c0_8] : memref<4x16x8xf32, #tpu.memory_space<vmem>>, vector<1x16x8xf32>
    %8 = vector.shape_cast %7 : vector<1x16x8xf32> to vector<16x8xf32>
    %9 = vector.shape_cast %6 : vector<16x8xf32> to vector<1x16x8xf32>
    tpu.vector_store %arg4[%c0_6, %c0_7, %c0_8], %9 {strides = array<i32>} : memref<4x16x8xf32, #tpu.memory_space<vmem>>, vector<1x16x8xf32>,
    %c1 = arith.constant 1 : index
    %c0_9 = arith.constant 0 : index
    %c0_10 = arith.constant 0 : index
    %10 = vector.load %arg1[%c1, %c0_9, %c0_10] : memref<4x32x8xf32, #tpu.memory_space<vmem>>, vector<1x32x8xf32>
    %11 = vector.shape_cast %10 : vector<1x32x8xf32> to vector<32x8xf32>
    %cst_11 = arith.constant dense<0.000000e+00> : vector<16x8xf32>
    %12 = tpu.matmul %0, %11, %cst_11 {dimension_numbers = #tpu.dot_dimension_numbers<[1], [0], [0], [1], [0, 0, 1, 1], [], []>} : vector<16x32xf32>, vector<32x8xf32>, vector<16x8xf32> -> vector<16x8xf32>
    %13 = vector.broadcast %1 : vector<16x1xf32> to vector<16x8xf32>
    %14 = arith.addf %12, %13 : vector<16x8xf32>
    %c1_12 = arith.constant 1 : index
    %c0_13 = arith.constant 0 : index
    %c0_14 = arith.constant 0 : index
    %15 = vector.load %arg4[%c1_12, %c0_13, %c0_14] : memref<4x16x8xf32, #tpu.memory_space<vmem>>, vector<1x16x8xf32>
    %16 = vector.shape_cast %15 : vector<1x16x8xf32> to vector<16x8xf32>
    %17 = vector.shape_cast %14 : vector<16x8xf32> to vector<1x16x8xf32>
    tpu.vector_store %arg4[%c1_12, %c0_13, %c0_14], %17 {strides = array<i32>} : memref<4x16x8xf32, #tpu.memory_space<vmem>>, vector<1x16x8xf32>,
    %c2 = arith.constant 2 : index
    %c0_15 = arith.constant 0 : index
    %c0_16 = arith.constant 0 : index
    %18 = vector.load %arg1[%c2, %c0_15, %c0_16] : memref<4x32x8xf32, #tpu.memory_space<vmem>>, vector<1x32x8xf32>
    %19 = vector.shape_cast %18 : vector<1x32x8xf32> to vector<32x8xf32>
    %cst_17 = arith.constant dense<0.000000e+00> : vector<16x8xf32>
    %20 = tpu.matmul %0, %19, %cst_17 {dimension_numbers = #tpu.dot_dimension_numbers<[1], [0], [0], [1], [0, 0, 1, 1], [], []>} : vector<16x32xf32>, vector<32x8xf32>, vector<16x8xf32> -> vector<16x8xf32>
    %21 = vector.broadcast %1 : vector<16x1xf32> to vector<16x8xf32>
    %22 = arith.addf %20, %21 : vector<16x8xf32>
    %c2_18 = arith.constant 2 : index
    %c0_19 = arith.constant 0 : index
    %c0_20 = arith.constant 0 : index
    %23 = vector.load %arg4[%c2_18, %c0_19, %c0_20] : memref<4x16x8xf32, #tpu.memory_space<vmem>>, vector<1x16x8xf32>
    %24 = vector.shape_cast %23 : vector<1x16x8xf32> to vector<16x8xf32>
    %25 = vector.shape_cast %22 : vector<16x8xf32> to vector<1x16x8xf32>
    tpu.vector_store %arg4[%c2_18, %c0_19, %c0_20], %25 {strides = array<i32>} : memref<4x16x8xf32, #tpu.memory_space<vmem>>, vector<1x16x8xf32>,
    %c3 = arith.constant 3 : index
    %c0_21 = arith.constant 0 : index
    %c0_22 = arith.constant 0 : index
    %26 = vector.load %arg1[%c3, %c0_21, %c0_22] : memref<4x32x8xf32, #tpu.memory_space<vmem>>, vector<1x32x8xf32>
    %27 = vector.shape_cast %26 : vector<1x32x8xf32> to vector<32x8xf32>
    %cst_23 = arith.constant dense<0.000000e+00> : vector<16x8xf32>
    %28 = tpu.matmul %0, %27, %cst_23 {dimension_numbers = #tpu.dot_dimension_numbers<[1], [0], [0], [1], [0, 0, 1, 1], [], []>} : vector<16x32xf32>, vector<32x8xf32>, vector<16x8xf32> -> vector<16x8xf32>
    %29 = vector.broadcast %1 : vector<16x1xf32> to vector<16x8xf32>
    %30 = arith.addf %28, %29 : vector<16x8xf32>
    %c3_24 = arith.constant 3 : index
    %c0_25 = arith.constant 0 : index
    %c0_26 = arith.constant 0 : index
    %31 = vector.load %arg4[%c3_24, %c0_25, %c0_26] : memref<4x16x8xf32, #tpu.memory_space<vmem>>, vector<1x16x8xf32>
    %32 = vector.shape_cast %31 : vector<1x16x8xf32> to vector<16x8xf32>
    %33 = vector.shape_cast %30 : vector<16x8xf32> to vector<1x16x8xf32>
    tpu.vector_store %arg4[%c3_24, %c0_25, %c0_26], %33 {strides = array<i32>} : memref<4x16x8xf32, #tpu.memory_space<vmem>>, vector<1x16x8xf32>,
    return
  }
  func.func @transform_0(%arg0: i32) -> (i32, i32, i32) {
    %c0_i32 = arith.constant 0 : i32
    %c0_i32_0 = arith.constant 0 : i32
    %c0_i32_1 = arith.constant 0 : i32
    return %arg0, %c0_i32, %c0_i32_0 : i32, i32, i32
  }
  func.func @transform_1(%arg0: i32) -> (i32, i32) {
    %c0_i32 = arith.constant 0 : i32
    %c0_i32_0 = arith.constant 0 : i32
    %c0_i32_1 = arith.constant 0 : i32
    return %c0_i32, %c0_i32_0 : i32, i32
  }
  func.func @transform_2(%arg0: i32) -> (i32, i32) {
    %c0_i32 = arith.constant 0 : i32
    %c0_i32_0 = arith.constant 0 : i32
    %c0_i32_1 = arith.constant 0 : i32
    return %c0_i32, %c0_i32_0 : i32, i32
  }
  func.func @transform_3(%arg0: i32) -> (i32, i32, i32) {
    %c0_i32 = arith.constant 0 : i32
    %c0_i32_0 = arith.constant 0 : i32
    %c0_i32_1 = arith.constant 0 : i32
    return %arg0, %c0_i32, %c0_i32_0 : i32, i32, i32
  }
}

</mosaic_0001>

<bundles_post_ra>
// kernel: tpu_custom_call.1
= control target key start
LH: loop header
LB: loop body
LE: loop exit
PB: predicated region body
PF: predicated region fallthrough
CT: control target
= control target key end

     0   :  { %s769_s12 = smov 0   ;;  %s818_s0 = inlined_call_operand.vmem [shape: f32[8,32,8], index: 0, kind: input, shape index: {}]   ;;  %s819_s1 = inlined_call_operand.vmem [shape: f32[16,32], index: 1, kind: input, shape index: {}]   ;;  %s820_s2 = inlined_call_operand.vmem [shape: f32[16,1], index: 2, kind: input, shape index: {}]   ;;  %s821_s3 = inlined_call_operand.vmem [shape: f32[8,16,8], index: 3, kind: output, shape index: {}]  }
   0x1 LB: > { %s589_s13 = sadd.s32 4294967295, %s746_s12   ;;  %p593_p0 = scmp.ge.s32.totalorder %s746_s12, 1  ;;  %s746_s12 = sphi %s769_s12, %s13_s12  }
   0x2   : > { %p139_p1 = scmp.lt.s32.totalorder %s746_s12, 3 }
   0x4   : > { %p140_p2 = pnand %p593_p0, %p139_p1 }
   0x5   : > { %s594_s14 = sshll.u32 (!%p140_p2), %s589_s13, 2  ;;  %v179_v0 = vld [vmem:[%s819_s1] sm:$0xff] (!%p140_p2)  ;;  %vm197_vm0 = vcmask (!%p140_p2), 261120   ;;  %v748_v2 = vmov (!%p140_p2), 0   ;;  %v182_v3 = vld [vmem:[%s820_s2 + $0x8] sm:$0xff] (!%p140_p2)  ;;  %vm279_vm1 = vcmask (!%p140_p2), 64512  }
   0x6   : > { %143 = sbr.rel (%p140_p2) target bundleno = 252 (0xfc), region = 32  ;;  %v181_v1 = vld [vmem:[%s820_s2] sm:$0xff] (!%p140_p2)  ;;  %p166_p3 = scmp.lt.s32.totalorder (!%p140_p2), %s594_s14, 7  ;;  %662 = vmatprep.mubr.msk.f32.mxu0 (!%p140_p2), %vm197_vm0, %v179_v0  ;;  %673 = vmatprep.mubr.msk.f32.mxu1 (!%p140_p2), %vm197_vm0, %v179_v0  ;;  %v180_v26 = vld [vmem:[%s819_s1 + $0x8] sm:$0xff] (!%p140_p2) }
   0x7   : > { %739 = vset.pattern.permute.xlu0 (!%p140_p2), %v748_v2 }
   0x8   : > { %189 = vperm.xlu0 (!%p140_p2), %739, %v181_v1  }
   0xc   : > { %194 = vperm.xlu0 (!%p140_p2), %739, %v182_v3  }
   0xd   : > { %s823_s14 = smov (!%p166_p3, %s594_s14), 7 }
   0xe   : > { %s628_s21 = sshll.u32 %s823_s14, 5  ;;  %s629_s27 = sshll.u32 %s823_s14, 4 }
   0xf   : > { %s170_s24 = scalar_lea.vmem %s818_s0, %s628_s21  ;;  %s177_s30 = scalar_lea.vmem %s821_s3, %s629_s27 }
  0x10   : > { %v183_v4 = vld [vmem:[%s170_s24] sm:$0xff]  ;;  %v184_v5 = vld [vmem:[%s170_s24 + $0x8] sm:$0xff]  ;;  %v185_v9 = vld [vmem:[%s170_s24 + $0x10] sm:$0xff] }
  0x11   : > { %v602_v6 = vld [vmem:[%s170_s24 + $0x20] sm:$0xff]  ;;  %v698_v7 = vpack.c.bf16 %v184_v5, %v183_v4  ;;  %v603_v8 = vld [vmem:[%s170_s24 + $0x28] sm:$0xff]  ;;  %v186_v10 = vld [vmem:[%s170_s24 + $0x18] sm:$0xff] }
  0x12   : > { %v706_v11 = vpack.c.bf16 %v603_v8, %v602_v6  ;;  %v702_v12 = vpack.c.bf16 %v186_v10, %v185_v9  ;;  %v604_v13 = vld [vmem:[%s170_s24 + $0x30] sm:$0xff]  ;;  %v605_v14 = vld [vmem:[%s170_s24 + $0x38] sm:$0xff]  ;;  %v610_v15 = vld [vmem:[%s170_s24 + $0x40] sm:$0xff] }
  0x13   : > { %699 = vmatprep.subr.bf16.mxu0 %v698_v7  ;;  %v710_v16 = vpack.c.bf16 %v605_v14, %v604_v13  ;;  %v611_v17 = vld [vmem:[%s170_s24 + $0x48] sm:$0xff]  ;;  %v618_v18 = vld [vmem:[%s170_s24 + $0x60] sm:$0xff]  ;;  %v612_v22 = vld [vmem:[%s170_s24 + $0x50] sm:$0xff] }
  0x14   : > { %v619_v19 = vld [vmem:[%s170_s24 + $0x68] sm:$0xff]  ;;  %707 = vmatprep.subr.bf16.mxu1 %v706_v11  ;;  %701 = vmatpush3.bf16.msra.mxu0 %v698_v7  ;;  %v714_v20 = vpack.c.bf16 %v611_v17, %v610_v15  ;;  %v613_v23 = vld [vmem:[%s170_s24 + $0x58] sm:$0xff]  ;;  %v620_v24 = vld [vmem:[%s170_s24 + $0x70] sm:$0xff] }
  0x15   : > { %709 = vmatpush3.bf16.msra.mxu1 %v706_v11  ;;  %703 = vmatprep.subr.bf16.mxu0 %v702_v12  ;;  %v722_v21 = vpack.c.bf16 %v619_v19, %v618_v18  ;;  %v621_v25 = vld [vmem:[%s170_s24 + $0x78] sm:$0xff]  ;;  %v718_v27 = vpack.c.bf16 %v613_v23, %v612_v22 }
  0x16   : > { %711 = vmatprep.subr.bf16.mxu1 %v710_v16  ;;  %v726_v28 = vpack.c.bf16 %v621_v25, %v620_v24 }
  0x18   : > { %705 = vmatpush3.bf16.msra.mxu0 %v702_v12 }
  0x19   : > { %713 = vmatpush3.bf16.msra.mxu1 %v710_v16  ;;  %715 = vmatprep.subr.bf16.mxu0 %v714_v20 }
  0x1a   : > { %723 = vmatprep.subr.bf16.mxu1 %v722_v21 }
  0x1b   : > { %663 = vmatmul.mubr.msk.f32.vlgmr.msra.gmra.mrb[0].mxu0 %vm197_vm0, %v180_v26 }
  0x1c   : > { %674 = vmatmul.mubr.msk.f32.vlgmr.msra.gmra.mrb[0].mxu1 %vm197_vm0, %v180_v26  ;;  %717 = vmatpush3.bf16.msra.mxu0 %v714_v20 }
  0x1d   : > { %725 = vmatpush3.bf16.msra.mxu1 %v722_v21  ;;  %719 = vmatprep.subr.bf16.mxu0 %v718_v27 }
  0x1e   : > { %727 = vmatprep.subr.bf16.mxu1 %v726_v28  ;;  %684 = vmatprep.mubr.msk.f32.mxu0 %vm197_vm0, %v179_v0 }
  0x1f   : > { %695 = vmatprep.mubr.msk.f32.mxu1 %vm197_vm0, %v179_v0 }
  0x20   : > { %721 = vmatpush3.bf16.msra.mxu0 %v718_v27 }
  0x21   : > { %729 = vmatpush3.bf16.msra.mxu1 %v726_v28 }
  0x23   : > { %685 = vmatmul.mubr.msk.f32.vlgmr.msra.gmra.mrb[2].mxu0 %vm197_vm0, %v180_v26 }
  0x24   : > { %696 = vmatmul.mubr.msk.f32.vlgmr.msra.gmra.mrb[2].mxu1 %vm197_vm0, %v180_v26 }
  0x87   : > { %v190_v29 = vpop.permute.xlu0 %189 }
  0x8b   : > { %v195_v30 = vpop.permute.xlu0 %194 }
  0xee   : > { %v664_v31 = vpop.f32.mrb[0].mxu0 }
  0xef   : > { %v276_v32 = vadd.f32 %v664_v31, %v195_v30  ;;  %v270_v33 = vpop.f32.mrb[1].mxu0  ;;  %v675_v34 = vpop.f32.mrb[0].mxu1 }
  0xf0   : > { %v271_v35 = vadd.f32 %v270_v33, %v190_v29  ;;  %v359_v36 = vadd.f32 %v675_v34, %v195_v30  ;;  %v353_v37 = vpop.f32.mrb[1].mxu1 }
  0xf1   : > { %281 = vst.msk [vmem:[%s177_s30 + $0x8] sm:$0xff] %vm279_vm1, %v276_v32  ;;  %v354_v38 = vadd.f32 %v353_v37, %v190_v29 }
  0xf2   : > { %280 = vst.msk [vmem:[%s177_s30] sm:$0xff] %vm279_vm1, %v271_v35  ;;  %609 = vst.msk [vmem:[%s177_s30 + $0x18] sm:$0xff] %vm279_vm1, %v359_v36 }
  0xf3   : > { %608 = vst.msk [vmem:[%s177_s30 + $0x10] sm:$0xff] %vm279_vm1, %v354_v38 }
  0xf6   : > { %v686_v39 = vpop.f32.mrb[2].mxu0 }
  0xf7   : > { %v442_v40 = vadd.f32 %v686_v39, %v195_v30  ;;  %v697_v41 = vpop.f32.mrb[2].mxu1  ;;  %v436_v42 = vpop.f32.mrb[3].mxu0 }
  0xf8   : > { %v525_v43 = vadd.f32 %v697_v41, %v195_v30  ;;  %v437_v44 = vadd.f32 %v436_v42, %v190_v29  ;;  %v519_v45 = vpop.f32.mrb[3].mxu1 }
  0xf9   : > { %617 = vst.msk [vmem:[%s177_s30 + $0x28] sm:$0xff] %vm279_vm1, %v442_v40  ;;  %v520_v46 = vadd.f32 %v519_v45, %v190_v29 }
  0xfa   : > { %625 = vst.msk [vmem:[%s177_s30 + $0x38] sm:$0xff] %vm279_vm1, %v525_v43  ;;  %616 = vst.msk [vmem:[%s177_s30 + $0x20] sm:$0xff] %vm279_vm1, %v437_v44 }
  0xfb   : > { %624 = vst.msk [vmem:[%s177_s30 + $0x30] sm:$0xff] %vm279_vm1, %v520_v46 }
  0xfc PF: > { %s13_s12 = sadd.s32 1, %s746_s12  }
  0xfd   : > { %p10_p4 = scmp.ge.s32.totalorder %s13_s12, 4  }
  0xff   :  { %12 = sbr.rel (!%p10_p4) target bundleno = 1 (0x1), region = 68 }

</bundles_post_ra>
